<compile_context>
chip_gen: v7x
topology: tpu7x:2x2x1
jax: 0.10.0
libtpu: 0.0.40
codegen_flags: <defaults>
</compile_context>

<pallas_src>
import jax
import jax.numpy as jnp
from jax.experimental import pallas as pl
from jax.experimental.pallas import tpu as pltpu


def mlp_kernel(x_ref, w2_ref, b2_ref, w3_ref, b3_ref, w4_ref, b4_ref,
               w5_ref, b5_ref, o_ref):
    # Full-f32 fused MLP: matmul (f32 accumulation) + bias + ReLU per layer,
    # final layer without activation. Stores only num_classes columns.
    h = x_ref[...]
    h = jnp.maximum(
        jnp.dot(h, w2_ref[...], preferred_element_type=jnp.float32) + b2_ref[...], 0.0)
    h = jnp.maximum(
        jnp.dot(h, w3_ref[...], preferred_element_type=jnp.float32) + b3_ref[...], 0.0)
    h = jnp.maximum(
        jnp.dot(h, w4_ref[...], preferred_element_type=jnp.float32) + b4_ref[...], 0.0)
    out = jnp.dot(h, w5_ref[...], preferred_element_type=jnp.float32) + b5_ref[...]
    o_ref[...] = out.astype(o_ref.dtype)


def _round_up(v, m):
    return ((v + m - 1) // m) * m


def _choose_tile(batch):
    """Pick the per-step batch tile TB and the padded batch B_pad."""
    if batch <= 8:
        # Single block equal to the full array: no padding, one grid step.
        return batch, batch
    # Large tiles amortize the ~0.35 us fixed per-step overhead; cap so that
    # big batches still get >= 2 grid steps (v7x has 2 TensorCores).
    tb = min(2048, _round_up(pl.cdiv(batch, 2), 256))
    tb = min(tb, _round_up(batch, 8))
    b_pad = _round_up(batch, tb)
    return tb, b_pad


def ti_simple_nn_edges_forward(x, params):
    """x: (B, num_nodes, num_features) (or already flat); params: dict of f32."""
    B = x.shape[0]
    x_flat = x.reshape(B, -1).astype(jnp.float32)
    input_dim = x_flat.shape[1]

    w2, b2 = params["w2"], params["b2"]
    w3, b3 = params["w3"], params["b3"]
    w4, b4 = params["w4"], params["b4"]
    w5, b5 = params["w5"], params["b5"]
    num_classes = w5.shape[1]

    TB, B_pad = _choose_tile(B)
    if B_pad != B:
        x_flat = jnp.pad(x_flat, ((0, B_pad - B), (0, 0)))

    grid = (B_pad // TB,)

    def resident_spec(a):
        # Full-array block whose index never changes -> stays VMEM-resident.
        return pl.BlockSpec(a.shape, lambda i, _nd=a.ndim: (0,) * _nd)

    hidden = (64, 64, 32)
    flops = 2 * B_pad * (input_dim * hidden[0] + hidden[0] * hidden[1]
                         + hidden[1] * hidden[2] + hidden[2] * num_classes)
    param_bytes = 4 * sum(int(p.size) for p in (w2, b2, w3, b3, w4, b4, w5, b5))
    bytes_accessed = 4 * (B_pad * input_dim + B_pad * num_classes) + param_bytes

    out = pl.pallas_call(
        mlp_kernel,
        out_shape=jax.ShapeDtypeStruct((B_pad, num_classes), jnp.float32),
        grid=grid,
        in_specs=[
            pl.BlockSpec((TB, input_dim), lambda i: (i, 0)),   # x tiles
            resident_spec(w2), resident_spec(b2),
            resident_spec(w3), resident_spec(b3),
            resident_spec(w4), resident_spec(b4),
            resident_spec(w5), resident_spec(b5),
        ],
        out_specs=pl.BlockSpec((TB, num_classes), lambda i: (i, 0)),
        compiler_params=pltpu.CompilerParams(
            dimension_semantics=("parallel",),
        ),
        cost_estimate=pl.CostEstimate(
            flops=flops, transcendentals=0, bytes_accessed=bytes_accessed),
    )(x_flat, w2, b2, w3, b3, w4, b4, w5, b5)

    if B_pad != B:
        out = out[:B]
    return out


def init_params(key, input_dim, num_classes):
    """Deterministic init mirroring nn.Linear's U(-1/sqrt(fan_in), 1/sqrt(fan_in))."""
    dims = [(input_dim, 64), (64, 64), (64, 32), (32, num_classes)]
    names = ["2", "3", "4", "5"]
    params = {}
    for (fan_in, fan_out), n in zip(dims, names):
        key, kw, kb = jax.random.split(key, 3)
        bound = 1.0 / jnp.sqrt(jnp.asarray(fan_in, jnp.float32))
        params[f"w{n}"] = jax.random.uniform(
            kw, (fan_in, fan_out), jnp.float32, -bound, bound)
        params[f"b{n}"] = jax.random.uniform(
            kb, (1, fan_out), jnp.float32, -bound, bound)
    return params


def reference_forward(x, params):
    h = x.reshape(x.shape[0], -1).astype(jnp.float32)
    h = jnp.maximum(h @ params["w2"] + params["b2"], 0.0)
    h = jnp.maximum(h @ params["w3"] + params["b3"], 0.0)
    h = jnp.maximum(h @ params["w4"] + params["b4"], 0.0)
    return h @ params["w5"] + params["b5"]


if __name__ == "__main__":
    # Shapes consistent with the module: num_nodes=8, num_features=4,
    # num_classes=10, no branch features -> input_dim = 32.
    num_nodes, num_features, num_classes = 8, 4, 10
    input_dim = num_nodes * num_features

    key = jax.random.PRNGKey(0)
    key, kp = jax.random.split(key)
    params = init_params(kp, input_dim, num_classes)

    ok = True
    for batch in (2, 37):  # tiny single-block case + padded/tiled case
        key, kx = jax.random.split(key)
        x = jax.random.normal(kx, (batch, num_nodes, num_features), jnp.float32)

        out = ti_simple_nn_edges_forward(x, params)
        out = jax.block_until_ready(out)

        ref = reference_forward(x, params)
        ok = ok and (out.shape == (batch, num_classes))
        ok = ok and bool(jnp.allclose(out, ref, atol=2e-2, rtol=2e-2))

    assert ok, "mismatch vs reference"
    print("KERNEL_OK")
</pallas_src>

<mosaic_0001>
module attributes {stable_mosaic.version = 11 : i64} {
  func.func @mlp_kernel(%arg0: i32, %arg1: memref<2x32xf32, #tpu.memory_space<vmem>>, %arg2: memref<32x64xf32, #tpu.memory_space<vmem>>, %arg3: memref<1x64xf32, #tpu.memory_space<vmem>>, %arg4: memref<64x64xf32, #tpu.memory_space<vmem>>, %arg5: memref<1x64xf32, #tpu.memory_space<vmem>>, %arg6: memref<64x32xf32, #tpu.memory_space<vmem>>, %arg7: memref<1x32xf32, #tpu.memory_space<vmem>>, %arg8: memref<32x10xf32, #tpu.memory_space<vmem>>, %arg9: memref<1x10xf32, #tpu.memory_space<vmem>>, %arg10: memref<2x10xf32, #tpu.memory_space<vmem>>) attributes {dimension_semantics = [#tpu.dimension_semantics<parallel>], iteration_bounds = array<i64: 1>, scalar_prefetch = 0 : i64, scratch_operands = 0 : i64, tpu.core_type = #tpu.core_type<tc>, window_params = [{transform_indices = @transform_0, window_bounds = array<i64: 2, 32>}, {pipeline_mode = #tpu.pipeline_mode<synchronous>, transform_indices = @transform_1, window_bounds = array<i64: 32, 64>}, {pipeline_mode = #tpu.pipeline_mode<synchronous>, transform_indices = @transform_2, window_bounds = array<i64: 1, 64>}, {pipeline_mode = #tpu.pipeline_mode<synchronous>, transform_indices = @transform_3, window_bounds = array<i64: 64, 64>}, {pipeline_mode = #tpu.pipeline_mode<synchronous>, transform_indices = @transform_4, window_bounds = array<i64: 1, 64>}, {pipeline_mode = #tpu.pipeline_mode<synchronous>, transform_indices = @transform_5, window_bounds = array<i64: 64, 32>}, {pipeline_mode = #tpu.pipeline_mode<synchronous>, transform_indices = @transform_6, window_bounds = array<i64: 1, 32>}, {pipeline_mode = #tpu.pipeline_mode<synchronous>, transform_indices = @transform_7, window_bounds = array<i64: 32, 10>}, {pipeline_mode = #tpu.pipeline_mode<synchronous>, transform_indices = @transform_8, window_bounds = array<i64: 1, 10>}, {transform_indices = @transform_9, window_bounds = array<i64: 2, 10>}]} {
    %c0 = arith.constant 0 : index
    %c0_0 = arith.constant 0 : index
    %0 = vector.load %arg1[%c0, %c0_0] : memref<2x32xf32, #tpu.memory_space<vmem>>, vector<2x32xf32>
    %c0_1 = arith.constant 0 : index
    %c0_2 = arith.constant 0 : index
    %1 = vector.load %arg2[%c0_1, %c0_2] : memref<32x64xf32, #tpu.memory_space<vmem>>, vector<32x64xf32>
    %cst = arith.constant dense<0.000000e+00> : vector<2x64xf32>
    %2 = tpu.matmul %0, %1, %cst {dimension_numbers = #tpu.dot_dimension_numbers<[1], [0], [0], [1], [0, 0, 1, 1], [], []>} : vector<2x32xf32>, vector<32x64xf32>, vector<2x64xf32> -> vector<2x64xf32>
    %c0_3 = arith.constant 0 : index
    %c0_4 = arith.constant 0 : index
    %3 = vector.load %arg3[%c0_3, %c0_4] : memref<1x64xf32, #tpu.memory_space<vmem>>, vector<1x64xf32>
    %4 = vector.broadcast %3 : vector<1x64xf32> to vector<2x64xf32>
    %5 = arith.addf %2, %4 : vector<2x64xf32>
    %cst_5 = arith.constant 0.000000e+00 : f32
    %6 = vector.broadcast %cst_5 : f32 to vector<2x64xf32>
    %7 = arith.maximumf %5, %6 : vector<2x64xf32>
    %c0_6 = arith.constant 0 : index
    %c0_7 = arith.constant 0 : index
    %8 = vector.load %arg4[%c0_6, %c0_7] : memref<64x64xf32, #tpu.memory_space<vmem>>, vector<64x64xf32>
    %cst_8 = arith.constant dense<0.000000e+00> : vector<2x64xf32>
    %9 = tpu.matmul %7, %8, %cst_8 {dimension_numbers = #tpu.dot_dimension_numbers<[1], [0], [0], [1], [0, 0, 1, 1], [], []>} : vector<2x64xf32>, vector<64x64xf32>, vector<2x64xf32> -> vector<2x64xf32>
    %c0_9 = arith.constant 0 : index
    %c0_10 = arith.constant 0 : index
    %10 = vector.load %arg5[%c0_9, %c0_10] : memref<1x64xf32, #tpu.memory_space<vmem>>, vector<1x64xf32>
    %11 = vector.broadcast %10 : vector<1x64xf32> to vector<2x64xf32>
    %12 = arith.addf %9, %11 : vector<2x64xf32>
    %cst_11 = arith.constant 0.000000e+00 : f32
    %13 = vector.broadcast %cst_11 : f32 to vector<2x64xf32>
    %14 = arith.maximumf %12, %13 : vector<2x64xf32>
    %c0_12 = arith.constant 0 : index
    %c0_13 = arith.constant 0 : index
    %15 = vector.load %arg6[%c0_12, %c0_13] : memref<64x32xf32, #tpu.memory_space<vmem>>, vector<64x32xf32>
    %cst_14 = arith.constant dense<0.000000e+00> : vector<2x32xf32>
    %16 = tpu.matmul %14, %15, %cst_14 {dimension_numbers = #tpu.dot_dimension_numbers<[1], [0], [0], [1], [0, 0, 1, 1], [], []>} : vector<2x64xf32>, vector<64x32xf32>, vector<2x32xf32> -> vector<2x32xf32>
    %c0_15 = arith.constant 0 : index
    %c0_16 = arith.constant 0 : index
    %17 = vector.load %arg7[%c0_15, %c0_16] : memref<1x32xf32, #tpu.memory_space<vmem>>, vector<1x32xf32>
    %18 = vector.broadcast %17 : vector<1x32xf32> to vector<2x32xf32>
    %19 = arith.addf %16, %18 : vector<2x32xf32>
    %cst_17 = arith.constant 0.000000e+00 : f32
    %20 = vector.broadcast %cst_17 : f32 to vector<2x32xf32>
    %21 = arith.maximumf %19, %20 : vector<2x32xf32>
    %c0_18 = arith.constant 0 : index
    %c0_19 = arith.constant 0 : index
    %22 = vector.load %arg8[%c0_18, %c0_19] : memref<32x10xf32, #tpu.memory_space<vmem>>, vector<32x10xf32>
    %cst_20 = arith.constant dense<0.000000e+00> : vector<2x10xf32>
    %23 = tpu.matmul %21, %22, %cst_20 {dimension_numbers = #tpu.dot_dimension_numbers<[1], [0], [0], [1], [0, 0, 1, 1], [], []>} : vector<2x32xf32>, vector<32x10xf32>, vector<2x10xf32> -> vector<2x10xf32>
    %c0_21 = arith.constant 0 : index
    %c0_22 = arith.constant 0 : index
    %24 = vector.load %arg9[%c0_21, %c0_22] : memref<1x10xf32, #tpu.memory_space<vmem>>, vector<1x10xf32>
    %25 = vector.broadcast %24 : vector<1x10xf32> to vector<2x10xf32>
    %26 = arith.addf %23, %25 : vector<2x10xf32>
    %c0_23 = arith.constant 0 : index
    %c0_24 = arith.constant 0 : index
    %27 = vector.load %arg10[%c0_23, %c0_24] : memref<2x10xf32, #tpu.memory_space<vmem>>, vector<2x10xf32>
    tpu.vector_store %arg10[%c0_23, %c0_24], %26 {strides = array<i32>} : memref<2x10xf32, #tpu.memory_space<vmem>>, vector<2x10xf32>,
    return
  }
  func.func @transform_0(%arg0: i32) -> (i32, i32) {
    %c0_i32 = arith.constant 0 : i32
    %c0_i32_0 = arith.constant 0 : i32
    return %arg0, %c0_i32 : i32, i32
  }
  func.func @transform_1(%arg0: i32) -> (i32, i32) {
    %c0_i32 = arith.constant 0 : i32
    %c0_i32_0 = arith.constant 0 : i32
    %c0_i32_1 = arith.constant 0 : i32
    return %c0_i32, %c0_i32_0 : i32, i32
  }
  func.func @transform_2(%arg0: i32) -> (i32, i32) {
    %c0_i32 = arith.constant 0 : i32
    %c0_i32_0 = arith.constant 0 : i32
    %c0_i32_1 = arith.constant 0 : i32
    return %c0_i32, %c0_i32_0 : i32, i32
  }
  func.func @transform_3(%arg0: i32) -> (i32, i32) {
    %c0_i32 = arith.constant 0 : i32
    %c0_i32_0 = arith.constant 0 : i32
    %c0_i32_1 = arith.constant 0 : i32
    return %c0_i32, %c0_i32_0 : i32, i32
  }
  func.func @transform_4(%arg0: i32) -> (i32, i32) {
    %c0_i32 = arith.constant 0 : i32
    %c0_i32_0 = arith.constant 0 : i32
    %c0_i32_1 = arith.constant 0 : i32
    return %c0_i32, %c0_i32_0 : i32, i32
  }
  func.func @transform_5(%arg0: i32) -> (i32, i32) {
    %c0_i32 = arith.constant 0 : i32
    %c0_i32_0 = arith.constant 0 : i32
    %c0_i32_1 = arith.constant 0 : i32
    return %c0_i32, %c0_i32_0 : i32, i32
  }
  func.func @transform_6(%arg0: i32) -> (i32, i32) {
    %c0_i32 = arith.constant 0 : i32
    %c0_i32_0 = arith.constant 0 : i32
    %c0_i32_1 = arith.constant 0 : i32
    return %c0_i32, %c0_i32_0 : i32, i32
  }
  func.func @transform_7(%arg0: i32) -> (i32, i32) {
    %c0_i32 = arith.constant 0 : i32
    %c0_i32_0 = arith.constant 0 : i32
    %c0_i32_1 = arith.constant 0 : i32
    return %c0_i32, %c0_i32_0 : i32, i32
  }
  func.func @transform_8(%arg0: i32) -> (i32, i32) {
    %c0_i32 = arith.constant 0 : i32
    %c0_i32_0 = arith.constant 0 : i32
    %c0_i32_1 = arith.constant 0 : i32
    return %c0_i32, %c0_i32_0 : i32, i32
  }
  func.func @transform_9(%arg0: i32) -> (i32, i32) {
    %c0_i32 = arith.constant 0 : i32
    %c0_i32_0 = arith.constant 0 : i32
    return %arg0, %c0_i32 : i32, i32
  }
}

</mosaic_0001>

<bundles_post_ra>
// kernel: tpu_custom_call.1
= control target key start
LH: loop header
LB: loop body
LE: loop exit
PB: predicated region body
PF: predicated region fallthrough
CT: control target
= control target key end

     0   :  { %v559_v3 = vmov 0.0|0.0   ;;  %vm560_vm0 = vmmov 0   ;;  %v561_v6 = vmov 0.0   ;;  %s732_s0 = inlined_call_operand.vmem [shape: f32[2,32], index: 0, kind: input, shape index: {}]   ;;  %s733_s1 = inlined_call_operand.vmem [shape: f32[32,64], index: 1, kind: input, shape index: {}]   ;;  %s734_s2 = inlined_call_operand.vmem [shape: f32[1,64], index: 2, kind: input, shape index: {}]   ;;  %s735_s3 = inlined_call_operand.vmem [shape: f32[64,64], index: 3, kind: input, shape index: {}]   ;;  %s736_s4 = inlined_call_operand.vmem [shape: f32[1,64], index: 4, kind: input, shape index: {}]   ;;  %s737_s5 = inlined_call_operand.vmem [shape: f32[64,32], index: 5, kind: input, shape index: {}]   ;;  %s738_s6 = inlined_call_operand.vmem [shape: f32[1,32], index: 6, kind: input, shape index: {}]   ;;  %s739_s7 = inlined_call_operand.vmem [shape: f32[32,10], index: 7, kind: input, shape index: {}]   ;;  %s740_s8 = inlined_call_operand.vmem [shape: f32[1,10], index: 8, kind: input, shape index: {}]   ;;  %s741_s9 = inlined_call_operand.hbm [shape: f32[2,10], index: 9, kind: output, shape index: {}]  }
   0x1   :  { %v34_v0 = vld [vmem:[%s733_s1] sm:$0xff]  ;;  %v35_v1 = vld [vmem:[%s733_s1 + $0x8] sm:$0xff]  ;;  %v36_v2 = vld [vmem:[%s733_s1 + $0x10] sm:$0xff]  ;;  %495 = vmatprep.subr.bf16.mxu0 %v559_v3  ;;  %443 = vmatprep.mubr.msk.f32.mxu0 %vm560_vm0, %v561_v6 }
   0x2   :  { %v496_v4 = vpack.c.bf16 %v35_v1, %v34_v0  ;;  %v37_v5 = vld [vmem:[%s733_s1 + $0x18] sm:$0xff]  ;;  %v120_v7 = vld [vmem:[%s735_s3] sm:$0xff]  ;;  %501 = vmatprep.subr.bf16.mxu1 %v559_v3  ;;  %v121_v8 = vld [vmem:[%s735_s3 + $0x8] sm:$0xff]  ;;  %462 = vmatprep.mubr.msk.f32.mxu1 %vm560_vm0, %v561_v6 }
   0x3   :  { %v122_v9 = vld [vmem:[%s735_s3 + $0x10] sm:$0xff]  ;;  %v123_v10 = vld [vmem:[%s735_s3 + $0x18] sm:$0xff]  ;;  %v499_v11 = vpack.c.bf16 %v37_v5, %v36_v2  ;;  %v502_v12 = vpack.c.bf16 %v121_v8, %v120_v7 }
   0x4   :  { %497 = vmatpush3.bf16.msra.mxu0 %v496_v4 }
   0x5   :  { %498 = vmatprep.subr.bf16.mxu0 %v559_v3 }
   0x6   :  { %14 = vsyncpa [#allocation3], 0  ;;  %503 = vmatpush3.bf16.msra.mxu1 %v502_v12  ;;  %v505_v13 = vpack.c.bf16 %v123_v10, %v122_v9  ;;  %v124_v14 = vld [vmem:[%s735_s3 + $0x20] sm:$0xff]  ;;  %v125_v15 = vld [vmem:[%s735_s3 + $0x28] sm:$0xff]  ;;  %vm45_vm1 = vcmask 261120   ;;  %vm135_vm2 = vcmask 523264  }
   0x7   :  { %504 = vmatprep.subr.bf16.mxu1 %v559_v3  ;;  %v33_v16 = vld [vmem:[%s732_s0] sm:$0x3]  ;;  %v508_v17 = vpack.c.bf16 %v125_v15, %v124_v14  ;;  %v126_v18 = vld [vmem:[%s735_s3 + $0x30] sm:$0xff]  ;;  %v127_v19 = vld [vmem:[%s735_s3 + $0x38] sm:$0xff]  ;;  %s562_s17 = smov [#allocation2]   ;;  %vm383_vm3 = vcmask 74752  }
   0x8   :  { %500 = vmatpush3.bf16.msra.mxu0 %v499_v11  ;;  %v511_v20 = vpack.c.bf16 %v127_v19, %v126_v18  ;;  %v210_v21 = vld [vmem:[%s737_s5] sm:$0xff]  ;;  %v211_v22 = vld [vmem:[%s737_s5 + $0x8] sm:$0xff]  ;;  %v212_v23 = vld [vmem:[%s737_s5 + $0x10] sm:$0xff]  ;;  %s391_s18 = sshll.u32 %s562_s17, 4  ;;  %s392_s18 = int_to_ptr.vmem [resolvable:$true] %s391_s18 }
   0x9   :  { %513 = vmatprep.subr.bf16.mxu0 %v559_v3  ;;  %v514_v24 = vpack.c.bf16 %v211_v22, %v210_v21  ;;  %v213_v25 = vld [vmem:[%s737_s5 + $0x18] sm:$0xff]  ;;  %v214_v27 = vld [vmem:[%s737_s5 + $0x20] sm:$0xff]  ;;  %v215_v28 = vld [vmem:[%s737_s5 + $0x28] sm:$0xff]  ;;  %p540_p1 = scmp.lt.s32.totalorder %s392_s18, %s392_s18 }
   0xa   :  { %506 = vmatpush3.bf16.msra.mxu1 %v505_v13  ;;  %v517_v26 = vpack.c.bf16 %v213_v25, %v212_v23  ;;  %v520_v29 = vpack.c.bf16 %v215_v28, %v214_v27  ;;  %v399_v30 = vld [vmem:[%s734_s2] ss:$0 sm:$0xff]  ;;  %v216_v35 = vld [vmem:[%s737_s5 + $0x30] sm:$0xff]  ;;  %v217_v36 = vld [vmem:[%s737_s5 + $0x38] sm:$0xff] }
   0xb   :  { %444 = vmatmul.mubr.msk.f32.vlgmr.msra.gmra.mrb[0].mxu0 %vm45_vm1, %v33_v16  ;;  %507 = vmatprep.subr.bf16.mxu1 %v559_v3  ;;  %v523_v37 = vpack.c.bf16 %v217_v36, %v216_v35  ;;  %v299_v38 = vld [vmem:[%s739_s7] sm:$0xff]  ;;  %v300_v39 = vld [vmem:[%s739_s7 + $0x8] sm:$0xff]  ;;  %v301_v46 = vld [vmem:[%s739_s7 + $0x10] sm:$0xff] }
   0xc   :  { %481 = vmatprep.mubr.msk.f32.mxu0 %vm560_vm0, %v561_v6  ;;  %515 = vmatpush3.bf16.msra.mxu0 %v514_v24  ;;  %v526_v40 = vpack.c.bf16 %v300_v39, %v299_v38  ;;  %v401_v41 = vld [vmem:[%s736_s4] ss:$0 sm:$0xff]  ;;  %v302_v47 = vld [vmem:[%s739_s7 + $0x18] sm:$0xff]  ;;  %s535_s7 = scalar_lea.vmem %s392_s18, 32 }
   0xd   :  { %516 = vmatprep.subr.bf16.mxu0 %v559_v3  ;;  %v529_v48 = vpack.c.bf16 %v302_v47, %v301_v46  ;;  %v403_v49 = vld [vmem:[%s738_s6] ss:$0 sm:$0xff]  ;;  %p536_p0 = scmp.ne.s32.totalorder %s392_s18, %s535_s7  ;;  %p541_p2 = scmp.lt.s32.totalorder %s535_s7, %s535_s7 }
   0xe   :  { %509 = vmatpush3.bf16.msra.mxu1 %v508_v17  ;;  %v405_v54 = vld [vmem:[%s740_s8] ss:$0 sm:$0xff] }
   0xf   :  { %510 = vmatprep.subr.bf16.mxu1 %v559_v3  ;;  %p542_p3 = por %p541_p2, %p540_p1 }
  0x10   :  { %518 = vmatpush3.bf16.msra.mxu0 %v517_v26 }
  0x11   :  { %519 = vmatprep.subr.bf16.mxu0 %v559_v3  ;;  %p543_p4 = pnand %p542_p3, %p536_p0 }
  0x12   :  { %512 = vmatpush3.bf16.msra.mxu1 %v511_v20 }
  0x13   :  { %525 = vmatprep.subr.bf16.mxu1 %v559_v3 }
  0x14   :  { %521 = vmatpush3.bf16.msra.mxu0 %v520_v29 }
  0x15   :  { %522 = vmatprep.subr.bf16.mxu0 %v559_v3 }
  0x18   :  { %524 = vmatpush3.bf16.msra.mxu0 %v523_v37 }
  0xde   :  { %v115_v31 = vpop.f32.mrb[0].mxu0 }
  0xdf   :  { %v116_v32 = vadd.f32 %v399_v30, %v115_v31  ;;  %v445_v33 = vpop.f32.mrb[1].mxu0 }
  0xe1   :  { %v119_v34 = vmax.f32 %v116_v32, 0.0 }
  0xe3   :  { %463 = vmatmul.mubr.msk.f32.vlgmr.msra.gmra.mrb[0].mxu1 %vm135_vm2, %v119_v34 }
  0xe4   :  { %492 = vmatprep.mubr.msk.f32.mxu1 %vm560_vm0, %v561_v6  ;;  %527 = vmatpush3.bf16.msra.mxu1 %v526_v40 }
  0xe5   :  { %528 = vmatprep.subr.bf16.mxu1 %v559_v3 }
  0xe8   :  { %530 = vmatpush3.bf16.msra.mxu1 %v529_v48 }
 0x1b6   :  { %v205_v42 = vpop.f32.mrb[0].mxu1 }
 0x1b7   :  { %v206_v43 = vadd.f32 %v401_v41, %v205_v42  ;;  %v464_v44 = vpop.f32.mrb[1].mxu1 }
 0x1b9   :  { %v209_v45 = vmax.f32 %v206_v43, 0.0 }
 0x1bb   :  { %482 = vmatmul.mubr.msk.f32.vlgmr.msra.gmra.mrb[2].mxu0 %vm135_vm2, %v209_v45 }
 0x28e   :  { %v294_v50 = vpop.f32.mrb[2].mxu0 }
 0x28f   :  { %v295_v51 = vadd.f32 %v403_v49, %v294_v50  ;;  %v483_v52 = vpop.f32.mrb[3].mxu0 }
 0x291   :  { %v298_v53 = vmax.f32 %v295_v51, 0.0 }
 0x293   :  { %493 = vmatmul.mubr.msk.f32.vlgmr.msra.gmra.mrb[2].mxu1 %vm45_vm1, %v298_v53 }
 0x366   :  { %v379_v55 = vpop.f32.mrb[2].mxu1 }
 0x367   :  { %v380_v56 = vadd.f32 %v405_v54, %v379_v55  ;;  %v494_v57 = vpop.f32.mrb[3].mxu1 }
 0x369   :  { %384 = vst.msk [vmem:[#allocation2] sm:$0x3] %vm383_vm3, %v380_v56 }
 0x36a   :  { %546 = shalt.err (!%p543_p4)
}
 0x36b   :  { %s547_s3 = scalar_lea.hbm %s741_s9, 32 }
 0x36c   :  { %p548_p5 = scmp.ne.s32.totalorder %s741_s9, %s547_s3  ;;  %p551_p6 = scmp.lt.u32.totalorder %s547_s3, %s741_s9 }
 0x36e   :  { %p553_p7 = pnand %p551_p6, %p548_p5 }
 0x370   :  { %556 = shalt.err (!%p553_p7)
}
 0x371   :  { %394 = dma.vmem_to_hbm [thread:$0]  %s392_s18, 32, %s741_s9, [#allocation3]  }
 0x372   :  { %557 = dma.done.wait [#allocation3], 32  }
 0x373   :  { %558 = vsyncadd [#allocation3], 4294967264 }
 0x374   :  { %398 = vsyncpa [#allocation3], 1 }

</bundles_post_ra>
